<compile_context>
chip_gen: v7x
topology: tpu7x:2x2x1
jax: 0.10.0
libtpu: 0.0.40
codegen_flags: <defaults>
</compile_context>

<pallas_src>
import functools
import math

import jax
import jax.numpy as jnp
from jax.experimental import pallas as pl
from jax.experimental.pallas import tpu as pltpu

_LANE = 128
_VMEM_LIMIT_BYTES = 32 * 1024 * 1024        # safe on v5e / v6e / v7x
_RESIDENT_BUDGET_BYTES = 4 * 1024 * 1024    # per double-buffered resident operand


def _round_up(x, m):
    return ((x + m - 1) // m) * m


def _largest_tile(dim, cap):
    """Largest multiple of 128 <= cap that divides dim (dim is a multiple of 128)."""
    cap = max(_LANE, min(cap, dim))
    t = (cap // _LANE) * _LANE
    while dim % t != 0:
        t -= _LANE
    return t


def _pad2d(a, rows, cols, dtype=None):
    """Zero-pad a 2-D array to (rows, cols); returns `a` unchanged if already OK."""
    dtype = a.dtype if dtype is None else dtype
    if a.shape == (rows, cols) and a.dtype == dtype:
        return a
    return jnp.zeros((rows, cols), dtype).at[: a.shape[0], : a.shape[1]].set(
        a.astype(dtype)
    )


# ----------------------------------------------------------------------------
# Fused kernel: out[i, j] = sum_k adj[i, k] @ (x[k, :] @ W[:, j])  (+ bias[j])
# ----------------------------------------------------------------------------
def _fused_gcn_kernel(*refs, has_bias, cast_dtype, x_resident, tk):
    if has_bias:
        adj_ref, x_ref, w_ref, bias_ref, o_ref = refs
    else:
        adj_ref, x_ref, w_ref, o_ref = refs
        bias_ref = None

    k = pl.program_id(2)

    @pl.when(k == 0)
    def _init():
        o_ref[...] = jnp.zeros_like(o_ref)

    if x_resident:
        off = pl.multiple_of(k * tk, tk)
        xk = x_ref[pl.ds(off, tk), :]
    else:
        xk = x_ref[...]

    # In-kernel cast: HBM operands stay in their source dtype (no wrapper copy
    # of the N x N adjacency); the VPU cast hides under the adj DMA.
    xk = xk.astype(cast_dtype)
    w = w_ref[...].astype(cast_dtype)
    support = jnp.dot(xk, w, preferred_element_type=jnp.float32).astype(cast_dtype)
    a = adj_ref[...].astype(cast_dtype)

    # Accumulate directly into the f32 output block (VMEM-resident across k).
    o_ref[...] += jnp.dot(a, support, preferred_element_type=jnp.float32)

    if bias_ref is not None:
        @pl.when(k == pl.num_programs(2) - 1)
        def _finalize():
            o_ref[...] += bias_ref[...].astype(jnp.float32)


def _fused_gcn(adj_p, x_p, w_p, bias_p, *, cast_dtype, x_resident):
    n_p = adj_p.shape[0]
    fi_p = x_p.shape[1]
    fo_p = w_p.shape[1]

    tn = _largest_tile(fo_p, 512)
    tm = _largest_tile(n_p, 512)
    tk = _largest_tile(n_p, 1024)
    # v7x megacore: guarantee >= 2 blocks along a "parallel" axis when possible.
    if (n_p // tm) * (fo_p // tn) < 2 and n_p >= 2 * _LANE:
        tm = _largest_tile(n_p, n_p // 2)

    grid = (n_p // tm, fo_p // tn, n_p // tk)

    if x_resident:
        x_spec = pl.BlockSpec((n_p, fi_p), lambda i, j, k: (0, 0))   # fetched once
    else:
        x_spec = pl.BlockSpec((tk, fi_p), lambda i, j, k: (k, 0))    # streamed per k

    in_specs = [
        pl.BlockSpec((tm, tk), lambda i, j, k: (i, k)),              # adj (source dtype)
        x_spec,                                                      # x
        pl.BlockSpec((fi_p, tn), lambda i, j, k: (0, j)),            # W (VMEM-resident)
    ]
    args = [adj_p, x_p, w_p]
    if bias_p is not None:
        in_specs.append(pl.BlockSpec((1, tn), lambda i, j, k: (0, j)))
        args.append(bias_p)

    n_row_blocks = n_p // tm
    flops = 2 * n_p * n_p * fo_p + 2 * n_row_blocks * n_p * fi_p * fo_p
    bytes_accessed = (
        adj_p.size * adj_p.dtype.itemsize
        + (1 if x_resident else n_row_blocks) * x_p.size * x_p.dtype.itemsize
        + w_p.size * w_p.dtype.itemsize
        + n_p * fo_p * 4
        + (bias_p.size * bias_p.dtype.itemsize if bias_p is not None else 0)
    )
    cost = pl.CostEstimate(
        flops=flops, transcendentals=0, bytes_accessed=bytes_accessed
    )

    kernel = functools.partial(
        _fused_gcn_kernel,
        has_bias=bias_p is not None,
        cast_dtype=cast_dtype,
        x_resident=x_resident,
        tk=tk,
    )

    return pl.pallas_call(
        kernel,
        out_shape=jax.ShapeDtypeStruct((n_p, fo_p), jnp.float32),
        grid_spec=pltpu.PrefetchScalarGridSpec(
            num_scalar_prefetch=0,
            grid=grid,
            in_specs=in_specs,
            out_specs=pl.BlockSpec((tm, tn), lambda i, j, k: (i, j)),
        ),
        compiler_params=pltpu.CompilerParams(
            dimension_semantics=("parallel", "parallel", "arbitrary"),
            vmem_limit_bytes=_VMEM_LIMIT_BYTES,
        ),
        cost_estimate=cost,
    )(*args)


# ----------------------------------------------------------------------------
# Generic tiled matmul (fallback, only used when a W column-block would not
# fit in VMEM): o = a @ b (+ bias), f32 output accumulated in place.
# ----------------------------------------------------------------------------
def _matmul_kernel(*refs, has_bias, cast_dtype):
    if has_bias:
        a_ref, b_ref, bias_ref, o_ref = refs
    else:
        a_ref, b_ref, o_ref = refs
        bias_ref = None

    k = pl.program_id(2)

    @pl.when(k == 0)
    def _init():
        o_ref[...] = jnp.zeros_like(o_ref)

    o_ref[...] += jnp.dot(
        a_ref[...].astype(cast_dtype),
        b_ref[...].astype(cast_dtype),
        preferred_element_type=jnp.float32,
    )

    if bias_ref is not None:
        @pl.when(k == pl.num_programs(2) - 1)
        def _finalize():
            o_ref[...] += bias_ref[...].astype(jnp.float32)


def _tiled_matmul(a, b, bias=None, *, cast_dtype):
    """a:[M,K] @ b:[K,N] (+ bias:[1,N]).  All dims must be multiples of 128."""
    m, kdim = a.shape
    _, nn = b.shape

    tm = _largest_tile(m, 512)
    tn = _largest_tile(nn, 512)
    tk = _largest_tile(kdim, 1024)
    if (m // tm) * (nn // tn) < 2 and m >= 2 * _LANE:
        tm = _largest_tile(m, m // 2)
    grid = (m // tm, nn // tn, kdim // tk)

    in_specs = [
        pl.BlockSpec((tm, tk), lambda i, j, k: (i, k)),
        pl.BlockSpec((tk, tn), lambda i, j, k: (k, j)),
    ]
    args = [a, b]
    if bias is not None:
        in_specs.append(pl.BlockSpec((1, tn), lambda i, j, k: (0, j)))
        args.append(bias)

    bytes_accessed = (
        a.size * a.dtype.itemsize
        + b.size * b.dtype.itemsize
        + m * nn * 4
        + (bias.size * bias.dtype.itemsize if bias is not None else 0)
    )
    cost = pl.CostEstimate(
        flops=2 * m * nn * kdim, transcendentals=0, bytes_accessed=bytes_accessed
    )

    kernel = functools.partial(
        _matmul_kernel, has_bias=bias is not None, cast_dtype=cast_dtype
    )

    return pl.pallas_call(
        kernel,
        out_shape=jax.ShapeDtypeStruct((m, nn), jnp.float32),
        grid_spec=pltpu.PrefetchScalarGridSpec(
            num_scalar_prefetch=0,
            grid=grid,
            in_specs=in_specs,
            out_specs=pl.BlockSpec((tm, tn), lambda i, j, k: (i, j)),
        ),
        compiler_params=pltpu.CompilerParams(
            dimension_semantics=("parallel", "parallel", "arbitrary"),
            vmem_limit_bytes=_VMEM_LIMIT_BYTES,
        ),
        cost_estimate=cost,
    )(*args)


# ----------------------------------------------------------------------------
# Wrapper
# ----------------------------------------------------------------------------
def dense_gcn(
    x,
    adj,
    weight,
    bias=None,
    *,
    use_bf16=True,
    min_pallas_nodes=128,
    x_resident=None,
    force_two_stage=False,
):
    """GCN forward: adj @ (x @ weight) + bias."""
    n, f_in = x.shape
    f_out = weight.shape[1]
    out_dtype = x.dtype

    # Tiny problems: pallas_call overhead dominates; let XLA fuse it directly.
    if n < min_pallas_nodes:
        out = adj @ (x @ weight)
        if bias is not None:
            out = out + bias[None, :]
        return out.astype(out_dtype)

    n_p = _round_up(n, _LANE)
    fi_p = _round_up(f_in, _LANE)
    fo_p = _round_up(f_out, _LANE)
    cast_dtype = jnp.bfloat16 if use_bf16 else jnp.float32

    # Only the small feature-dim operands are (cheaply) padded, and only when
    # their dims are not already lane-aligned.
    x_p = _pad2d(x, n_p, fi_p)
    w_p = _pad2d(weight, fi_p, fo_p)
    b_p = None
    if bias is not None:
        b_p = _pad2d(bias.reshape(1, -1), 1, fo_p, jnp.float32)

    # The N x N adjacency is passed straight through (no pad / pre-cast copy)
    # whenever N is lane-aligned; the kernel casts it to bf16 on the VPU.
    if n == n_p:
        adj_p = adj
    else:
        adj_p = _pad2d(adj, n_p, n_p, cast_dtype if use_bf16 else adj.dtype)

    tn = _largest_tile(fo_p, 512)
    w_block_bytes = 2 * fi_p * tn * w_p.dtype.itemsize     # double-buffered W block
    if x_resident is None:
        x_resident = 2 * x_p.size * x_p.dtype.itemsize <= _RESIDENT_BUDGET_BYTES

    if force_two_stage or w_block_bytes > _RESIDENT_BUDGET_BYTES:
        # Huge feature dims: W column-block will not fit VMEM -> two tiled stages.
        support = _tiled_matmul(x_p, w_p, cast_dtype=cast_dtype)
        out_p = _tiled_matmul(adj_p, support, b_p, cast_dtype=cast_dtype)
    else:
        out_p = _fused_gcn(
            adj_p, x_p, w_p, b_p, cast_dtype=cast_dtype, x_resident=x_resident
        )

    if n != n_p or f_out != fo_p:
        out_p = out_p[:n, :f_out]
    return out_p if out_p.dtype == out_dtype else out_p.astype(out_dtype)


def init_params(key, input_dim, output_dim):
    """Deterministic re-implementation of DenseGCN.reset_parameters."""
    k_w, k_b = jax.random.split(key)
    limit = math.sqrt(6.0 / (input_dim + output_dim))  # xavier_uniform_
    weight = jax.random.uniform(
        k_w, (input_dim, output_dim), dtype=jnp.float32, minval=-limit, maxval=limit
    )
    stdv = 1.0 / math.sqrt(input_dim)
    bias = jax.random.uniform(
        k_b, (output_dim,), dtype=jnp.float32, minval=-stdv, maxval=stdv
    )
    return weight, bias


if __name__ == "__main__":
    key = jax.random.PRNGKey(0)
    k_x, k_adj, k_p = jax.random.split(key, 3)

    N = 256      # nodes (large enough to exercise the Pallas path)
    F_IN = 64    # input feature dim  (padded to 128 inside the wrapper)
    F_OUT = 48   # output feature dim (padded to 128 inside the wrapper)

    x = jax.random.normal(k_x, (N, F_IN), dtype=jnp.float32)
    a_raw = jax.random.uniform(k_adj, (N, N), dtype=jnp.float32)
    adj = (a_raw + a_raw.T) / 2.0

    weight, bias = init_params(k_p, F_IN, F_OUT)

    ref = (
        jnp.dot(
            adj,
            jnp.dot(x, weight, precision=jax.lax.Precision.HIGHEST),
            precision=jax.lax.Precision.HIGHEST,
        )
        + bias[None, :]
    )
    ref_nobias = ref - bias[None, :]
    scale = jnp.max(jnp.abs(ref))

    # 1) Fused Pallas path, bf16 MXU operands / f32 accumulate (default).
    out = jax.block_until_ready(dense_gcn(x, adj, weight, bias))
    assert out.shape == (N, F_OUT)
    rel = jnp.max(jnp.abs(out - ref)) / scale
    assert rel < 2e-2, f"fused bf16 path mismatch: rel={rel}"

    # 2) Fused Pallas path, f32 operands (accuracy escape hatch).
    out32 = jax.block_until_ready(dense_gcn(x, adj, weight, bias, use_bf16=False))
    rel32 = jnp.max(jnp.abs(out32 - ref)) / scale
    assert rel32 < 1e-3, f"fused f32 path mismatch: rel={rel32}"

    # 3) Fused path with streamed (non-resident) x and no bias.
    out_s = jax.block_until_ready(dense_gcn(x, adj, weight, None, x_resident=False))
    rel_s = jnp.max(jnp.abs(out_s - ref_nobias)) / scale
    assert rel_s < 2e-2, f"streamed-x / no-bias path mismatch: rel={rel_s}"

    # 4) Two-stage tiled-matmul fallback path.
    out2 = jax.block_until_ready(dense_gcn(x, adj, weight, bias, force_two_stage=True))
    rel2 = jnp.max(jnp.abs(out2 - ref)) / scale
    assert rel2 < 2e-2, f"two-stage path mismatch: rel={rel2}"

    # 5) Tiny-problem fallback (pure XLA fusion), matching the original demo sizes.
    ws, bs = init_params(k_p, 32, 16)
    xs, adjs = x[:8, :32], adj[:8, :8]
    outs = jax.block_until_ready(dense_gcn(xs, adjs, ws, bs))
    refs_small = adjs @ (xs @ ws) + bs[None, :]
    assert jnp.allclose(outs, refs_small, atol=1e-4, rtol=1e-4), "fallback mismatch"

    print("KERNEL_OK")
</pallas_src>

<mosaic_0001>
module attributes {stable_mosaic.version = 11 : i64} {
  func.func @_fused_gcn_kernel(%arg0: i32, %arg1: i32, %arg2: i32, %arg3: memref<128x256xf32, #tpu.memory_space<vmem>>, %arg4: memref<256x128xf32, #tpu.memory_space<vmem>>, %arg5: memref<128x128xf32, #tpu.memory_space<vmem>>, %arg6: memref<1x128xf32, #tpu.memory_space<vmem>>, %arg7: memref<128x128xf32, #tpu.memory_space<vmem>>) attributes {dimension_semantics = [#tpu.dimension_semantics<parallel>, #tpu.dimension_semantics<parallel>, #tpu.dimension_semantics<arbitrary>], iteration_bounds = array<i64: 2, 1, 1>, scalar_prefetch = 0 : i64, scratch_operands = 0 : i64, tpu.core_type = #tpu.core_type<tc>, window_params = [{transform_indices = @transform_0, window_bounds = array<i64: 128, 256>}, {pipeline_mode = #tpu.pipeline_mode<synchronous>, transform_indices = @transform_1, window_bounds = array<i64: 256, 128>}, {transform_indices = @transform_2, window_bounds = array<i64: 128, 128>}, {transform_indices = @transform_3, window_bounds = array<i64: 1, 128>}, {transform_indices = @transform_4, window_bounds = array<i64: 128, 128>}]} {
    %c0_i32 = arith.constant 0 : i32
    %0 = arith.cmpi eq, %arg2, %c0_i32 : i32
    %1 = arith.extui %0 : i1 to i32
    %c0_i32_0 = arith.constant 0 : i32
    %2 = arith.cmpi ne, %1, %c0_i32_0 : i32
    scf.if %2 {
      %cst_12 = arith.constant 0.000000e+00 : f32
      %21 = vector.broadcast %cst_12 : f32 to vector<128x128xf32>
      %c0_13 = arith.constant 0 : index
      %c0_14 = arith.constant 0 : index
      %22 = vector.load %arg7[%c0_13, %c0_14] : memref<128x128xf32, #tpu.memory_space<vmem>>, vector<128x128xf32>
      tpu.vector_store %arg7[%c0_13, %c0_14], %21 {strides = array<i32>} : memref<128x128xf32, #tpu.memory_space<vmem>>, vector<128x128xf32>,
    } else {
    }
    %c256_i32 = arith.constant 256 : i32
    %3 = arith.muli %arg2, %c256_i32 : i32
    %4 = tpu.assume_multiple %3, 256 : i32
    %5 = arith.index_cast %4 : i32 to index
    %c0 = arith.constant 0 : index
    %6 = vector.load %arg4[%5, %c0] : memref<256x128xf32, #tpu.memory_space<vmem>>, vector<256x128xf32>
    %7 = arith.truncf %6 : vector<256x128xf32> to vector<256x128xbf16>
    %c0_1 = arith.constant 0 : index
    %c0_2 = arith.constant 0 : index
    %8 = vector.load %arg5[%c0_1, %c0_2] : memref<128x128xf32, #tpu.memory_space<vmem>>, vector<128x128xf32>
    %9 = arith.truncf %8 : vector<128x128xf32> to vector<128x128xbf16>
    %cst = arith.constant dense<0.000000e+00> : vector<256x128xf32>
    %10 = tpu.matmul %7, %9, %cst {dimension_numbers = #tpu.dot_dimension_numbers<[1], [0], [0], [1], [0, 0, 1, 1], [], []>} : vector<256x128xbf16>, vector<128x128xbf16>, vector<256x128xf32> -> vector<256x128xf32>
    %11 = arith.truncf %10 : vector<256x128xf32> to vector<256x128xbf16>
    %c0_3 = arith.constant 0 : index
    %c0_4 = arith.constant 0 : index
    %12 = vector.load %arg3[%c0_3, %c0_4] : memref<128x256xf32, #tpu.memory_space<vmem>>, vector<128x256xf32>
    %13 = arith.truncf %12 : vector<128x256xf32> to vector<128x256xbf16>
    %c0_5 = arith.constant 0 : index
    %c0_6 = arith.constant 0 : index
    %14 = vector.load %arg7[%c0_5, %c0_6] : memref<128x128xf32, #tpu.memory_space<vmem>>, vector<128x128xf32>
    %cst_7 = arith.constant dense<0.000000e+00> : vector<128x128xf32>
    %15 = tpu.matmul %13, %11, %cst_7 {dimension_numbers = #tpu.dot_dimension_numbers<[1], [0], [0], [1], [0, 0, 1, 1], [], []>} : vector<128x256xbf16>, vector<256x128xbf16>, vector<128x128xf32> -> vector<128x128xf32>
    %16 = arith.addf %14, %15 : vector<128x128xf32>
    %c0_8 = arith.constant 0 : index
    %c0_9 = arith.constant 0 : index
    %17 = vector.load %arg7[%c0_8, %c0_9] : memref<128x128xf32, #tpu.memory_space<vmem>>, vector<128x128xf32>
    tpu.vector_store %arg7[%c0_8, %c0_9], %16 {strides = array<i32>} : memref<128x128xf32, #tpu.memory_space<vmem>>, vector<128x128xf32>,
    %c0_i32_10 = arith.constant 0 : i32
    %18 = arith.cmpi eq, %arg2, %c0_i32_10 : i32
    %19 = arith.extui %18 : i1 to i32
    %c0_i32_11 = arith.constant 0 : i32
    %20 = arith.cmpi ne, %19, %c0_i32_11 : i32
    scf.if %20 {
      %c0_12 = arith.constant 0 : index
      %c0_13 = arith.constant 0 : index
      %21 = vector.load %arg7[%c0_12, %c0_13] : memref<128x128xf32, #tpu.memory_space<vmem>>, vector<128x128xf32>
      %c0_14 = arith.constant 0 : index
      %c0_15 = arith.constant 0 : index
      %22 = vector.load %arg6[%c0_14, %c0_15] : memref<1x128xf32, #tpu.memory_space<vmem>>, vector<1x128xf32>
      %23 = vector.broadcast %22 : vector<1x128xf32> to vector<128x128xf32>
      %24 = arith.addf %21, %23 : vector<128x128xf32>
      %c0_16 = arith.constant 0 : index
      %c0_17 = arith.constant 0 : index
      %25 = vector.load %arg7[%c0_16, %c0_17] : memref<128x128xf32, #tpu.memory_space<vmem>>, vector<128x128xf32>
      tpu.vector_store %arg7[%c0_16, %c0_17], %24 {strides = array<i32>} : memref<128x128xf32, #tpu.memory_space<vmem>>, vector<128x128xf32>,
    } else {
    }
    return
  }
  func.func @transform_0(%arg0: i32, %arg1: i32, %arg2: i32) -> (i32, i32) {
    %c0_i32 = arith.constant 0 : i32
    return %arg0, %arg2 : i32, i32
  }
  func.func @transform_1(%arg0: i32, %arg1: i32, %arg2: i32) -> (i32, i32) {
    %c0_i32 = arith.constant 0 : i32
    %c0_i32_0 = arith.constant 0 : i32
    %c0_i32_1 = arith.constant 0 : i32
    return %c0_i32, %c0_i32_0 : i32, i32
  }
  func.func @transform_2(%arg0: i32, %arg1: i32, %arg2: i32) -> (i32, i32) {
    %c0_i32 = arith.constant 0 : i32
    %c0_i32_0 = arith.constant 0 : i32
    return %c0_i32, %arg1 : i32, i32
  }
  func.func @transform_3(%arg0: i32, %arg1: i32, %arg2: i32) -> (i32, i32) {
    %c0_i32 = arith.constant 0 : i32
    %c0_i32_0 = arith.constant 0 : i32
    return %c0_i32, %arg1 : i32, i32
  }
  func.func @transform_4(%arg0: i32, %arg1: i32, %arg2: i32) -> (i32, i32) {
    %c0_i32 = arith.constant 0 : i32
    return %arg0, %arg1 : i32, i32
  }
}

</mosaic_0001>

<bundles_post_ra>
// kernel: tpu_custom_call.1
= control target key start
LH: loop header
LB: loop body
LE: loop exit
PB: predicated region body
PF: predicated region fallthrough
CT: control target
= control target key end

     0   :  { %9 = vsyncpa [#allocation3], 0  ;;  %s1747_s0 = inlined_call_operand.hbm [shape: f32[256,256], index: 0, kind: input, shape index: {}]   ;;  %s1748_s1 = inlined_call_operand.hbm [shape: f32[256,128], index: 1, kind: input, shape index: {}]   ;;  %s1749_s2 = inlined_call_operand.hbm [shape: f32[128,128], index: 2, kind: input, shape index: {}]   ;;  %s1750_s3 = inlined_call_operand.vmem [shape: f32[1,128], index: 3, kind: input, shape index: {}]   ;;  %s1751_s4 = inlined_call_operand.hbm [shape: f32[256,128], index: 4, kind: output, shape index: {}]  }
   0x1   :  { %11 = vsyncpa [#allocation3 + $0x1], 0 }
   0x2   :  { %12 = vsyncpa [#allocation6], 0 }
   0x3   :  { %13 = vsyncpa [#allocation4], 0 }
   0x4   :  { %15 = vsyncpa [#allocation4 + $0x1], 0  ;;  %s1417_s15 = smov 0   ;;  %s1419_s16 = smov 0  }
   0x5   :  { %s1421_s17 = smov 0   ;;  %s1423_s18 = smov 0  }
   0x6   :  { %s1425_s19 = smov 0   ;;  %s1427_s20 = smov 0  }
   0x7 LB: > { %s957_s21 = sadd.s32 4294967295, %s1380_s20   ;;  %s958_s22 = sadd.s32 4294967294, %s1380_s20   ;;  %s1380_s20 = sphi %s1427_s20, %s21_s20   ;;  %s1376_s19 = sphi %s1425_s19, %s1773_s19   ;;  %s1372_s18 = sphi %s1423_s18, %s1772_s18   ;;  %s1368_s17 = sphi %s1421_s17, %s1771_s17   ;;  %s1364_s16 = sphi %s1419_s16, %s1770_s16   ;;  %s1360_s15 = sphi %s1417_s15, %s1769_s15  }
   0x8   : > { %p62_p0 = scmp.ne.s32.totalorder %s1364_s16, %s1360_s15  ;;  %p1451_p1 = scmp.eq.s32.totalorder %s957_s21, 0 }
   0x9   : > { %p1455_p2 = scmp.eq.s32.totalorder %s957_s21, 1  ;;  %p167_p3 = scmp.eq.s32.totalorder %s958_s22, 1 }
   0xa   : > { %s1756_s23 = scalar_select %p1451_p1, 1, 0 }
   0xb   : > { %p1461_p4 = por %p1451_p1, %p62_p0  ;;  %p959_p5 = scmp.ge.s32.totalorder %s1380_s20, 1 }
   0xc   : > { %p1466_p6 = por %p167_p3, %p62_p0  ;;  %p174_p7 = scmp.lt.s32.totalorder %s1380_s20, 3 }
   0xd   : > { %s1758_s25 = scalar_select %p1461_p4, 1, 0 }
   0xe   : > { %s1759_s26 = scalar_select %p1466_p6, 1, 0 }
   0xf   : > { %p1471_p8 = pnand %p959_p5, %p174_p7  ;;  %s1382_s28 = smov [#allocation5]  }
  0x10   : > { %s186_s29 = sshll.u32 %s1382_s28, 4  ;;  %s1383_s5 = smov [#allocation7]   ;;  %s1475_s29 = int_to_ptr.vmem [resolvable:$true] %s186_s29 }
  0x11   : > { %p1130_p9 = pneg %p1471_p8  ;;  %s201_s6 = sshll.u32 %s1383_s5, 4  ;;  %s1486_s6 = int_to_ptr.vmem [resolvable:$true] %s201_s6 }
  0x12   : > { %s1208_s9 = scalar_lea.hbm %s1748_s1, 4096 }
  0x13   : > { %p1482_p11 = pnand %p1130_p9, %p1451_p1  ;;  %p1209_p12 = scmp.ne.s32.totalorder %s1748_s1, %s1208_s9 }
  0x14   : > { %p1215_p5 = scmp.lt.u32.totalorder %s1208_s9, %s1748_s1 }
  0x15   : > { %p1210_p13 = pneg %p1482_p11 }
  0x17   : > { %p1211_p0 = pnand %p1210_p13, %p1209_p12 }
  0x19   : > { %p1212_p3 = pneg %p1211_p0 }
  0x1b   : > { %p1217_p7 = pnand %p1215_p5, %p1212_p3 }
  0x1d   : > { %1220 = shalt.err (!%p1217_p7)
}
  0x1e   : > { %s1221_s14 = scalar_lea.vmem %s1475_s29, 4096  ;;  %p1229_p1 = scmp.lt.s32.totalorder %s1475_s29, %s1475_s29 }
  0x1f   : > { %p1222_p9 = scmp.ne.s32.totalorder %s1475_s29, %s1221_s14  ;;  %p1230_p12 = scmp.lt.s32.totalorder %s1221_s14, %s1221_s14 }
  0x21   : > { %p1224_p10 = pnand %p1222_p9, %p1210_p13  ;;  %p1231_p0 = por %p1230_p12, %p1229_p1 }
  0x23   : > { %p1225_p6 = pneg %p1224_p10 }
  0x25   : > { %p1232_p4 = pnand %p1231_p0, %p1225_p6 }
  0x27   : > { %1235 = shalt.err (!%p1232_p4)
}
  0x28   : > { %s1384_s21 = smov 128   ;;  %s1385_s22 = smov 8  }
  0x29   : > { %1133 = dma.hbm_to_vmem [thread:$0]  (!%p1482_p11), %s1748_s1, 4096, %s1475_s29, [#allocation6], %s1384_s21, %s1384_s21, %s1385_s22  }
  0x2a   : > { %s1236_s9 = scalar_lea.hbm %s1749_s2, 2048 }
  0x2b   : > { %p1237_p1 = scmp.ne.s32.totalorder %s1749_s2, %s1236_s9  ;;  %p1243_p10 = scmp.lt.u32.totalorder %s1236_s9, %s1749_s2 }
  0x2d   : > { %p1239_p4 = pnand %p1237_p1, %p1210_p13 }
  0x2f   : > { %p1240_p6 = pneg %p1239_p4 }
  0x31   : > { %p1245_p3 = pnand %p1243_p10, %p1240_p6 }
  0x33   : > { %1248 = shalt.err (!%p1245_p3)
}
  0x34   : > { %s1249_s29 = scalar_lea.vmem %s1486_s6, 2048  ;;  %p1257_p12 = scmp.lt.s32.totalorder %s1486_s6, %s1486_s6 }
  0x35   : > { %p1250_p5 = scmp.ne.s32.totalorder %s1486_s6, %s1249_s29  ;;  %p1258_p0 = scmp.lt.s32.totalorder %s1249_s29, %s1249_s29 }
  0x37   : > { %p1252_p7 = pnand %p1250_p5, %p1210_p13  ;;  %p1259_p1 = por %p1258_p0, %p1257_p12 }
  0x39   : > { %p1253_p9 = pneg %p1252_p7 }
  0x3b   : > { %p1260_p4 = pnand %p1259_p1, %p1253_p9 }
  0x3d   : > { %1263 = shalt.err (!%p1260_p4)
}
  0x3e   : > { %1136 = dma.hbm_to_vmem [thread:$0]  (!%p1482_p11), %s1749_s2, 2048, %s1486_s6, [#allocation6], %s1384_s21, %s1384_s21, %s1385_s22  }
  0x3f   : > { %s40_s5 = sadd.s32 1, %s1376_s19  ;;  %s49_s7 = sadd.s32 1, %s1368_s17 }
  0x40   : > { %p42_p13 = scmp.ge.s32.totalorder %s40_s5, 2  ;;  %p56_p6 = scmp.ne.s32.totalorder %s1368_s17, %s1364_s16 }
  0x41   : > { %p57_p10 = scmp.eq.s32.totalorder %s1380_s20, 0  ;;  %p1147_p3 = scmp.lt.s32.totalorder %s1380_s20, 2 }
  0x42   : > { %s1775_s5 = smov (%p42_p13, %s40_s5), 0  ;;  %p1550_p7 = por %p1455_p2, %p56_p6 }
  0x43   : > { %p58_p5 = por %p57_p10, %p56_p6  ;;  %s44_s8 = ssub.s32 %s1376_s19, %s1775_s5 }
  0x44   : > { %s1762_s30 = scalar_select %p1550_p7, 1, 0 }
  0x45   : > { %s221_s9 = sand.u32 1, %s1368_s17   ;;  %p47_p9 = scmp.eq.s32.totalorder %s44_s8, 0 }
  0x46   : > { %s964_s6 = sshll.u32 %s221_s9, 8  ;;  %s980_s21 = sshll.u32 %s1376_s19, 12 }
  0x47   : > { %s1559_s22 = scalar_select %p47_p9, %s1368_s17, %s49_s7  }
  0x48   : > { %s1564_s12 = scalar_lea.hbm %s1747_s0, %s980_s21  ;;  %s225_s24 = scalar_lea.vmem [#allocation2], %s964_s6 }
  0x49   : > { %s235_s13 = sshll.u32 %s225_s24, 4  ;;  %p1568_p2 = pnand %p1147_p3, %p58_p5  ;;  %s1572_s13 = int_to_ptr.vmem [resolvable:$true] %s235_s13 }
  0x4a   : > { %s1574_s14 = scalar_lea.sflag [#allocation3], %s221_s9  ;;  %s1264_s28 = scalar_lea.hbm %s1564_s12, 4096 }
  0x4b   : > { %p1265_p11 = scmp.ne.s32.totalorder %s1564_s12, %s1264_s28  ;;  %p1266_p12 = pneg %p1568_p2 }
  0x4c   : > { %s1269_s6 = scalar_lea.hbm %s1747_s0, 8192  ;;  %p1270_p4 = scmp.lt.u32.totalorder %s1564_s12, %s1747_s0 }
  0x4d   : > { %p1267_p0 = pnand %p1266_p12, %p1265_p11  ;;  %p1271_p13 = scmp.lt.u32.totalorder %s1269_s6, %s1264_s28 }
  0x4e   : > { %p1273_p10 = scmp.lt.u32.totalorder %s1264_s28, %s1564_s12 }
  0x4f   : > { %p1268_p1 = pneg %p1267_p0  ;;  %p1272_p6 = por %p1271_p13, %p1270_p4 }
  0x51   : > { %p1274_p3 = por %p1273_p10, %p1272_p6 }
  0x53   : > { %p1275_p5 = pnand %p1274_p3, %p1268_p1 }
  0x55   : > { %1278 = shalt.err (!%p1275_p5)
}
  0x56   : > { %s1279_s9 = scalar_lea.vmem %s1572_s13, 4096  ;;  %s1386_s11 = smov [#allocation2]  }
  0x57   : > { %p1280_p9 = scmp.ne.s32.totalorder %s1572_s13, %s1279_s9  ;;  %s1284_s24 = sshll.u32 %s1386_s11, 4  ;;  %s1285_s24 = int_to_ptr.vmem [resolvable:$false] %s1284_s24 }
  0x58   : > { %s1286_s7 = scalar_lea.vmem %s1285_s24, 8192  ;;  %p1287_p7 = scmp.lt.s32.totalorder %s1572_s13, %s1285_s24 }
  0x59   : > { %p1282_p11 = pnand %p1280_p9, %p1266_p12  ;;  %p1288_p4 = scmp.lt.s32.totalorder %s1286_s7, %s1279_s9 }
  0x5b   : > { %p1283_p0 = pneg %p1282_p11  ;;  %p1289_p13 = por %p1288_p4, %p1287_p7 }
  0x5d   : > { %p1290_p6 = pnand %p1289_p13, %p1283_p0 }
  0x5f   : > { %1293 = shalt.err (!%p1290_p6)
}
  0x60   : > { %s1387_s28 = smov 256   ;;  %s1388_s8 = smov 16  }
  0x61   : > { %1140 = dma.hbm_to_vmem [thread:$0]  (!%p1568_p2), %s1564_s12, 4096, %s1572_s13, %s1574_s14, %s1387_s28, %s1387_s28, %s1388_s8  }
  0x62   : > { %247 = sbr.rel (%p1471_p8) target bundleno = 715 (0x2cb), region = 36  ;;  %s1605_s6 = sand.u32 (!%p1471_p8), 1, %s1364_s16  }
  0x63   : > { %s969_s21 = sshll.u32 (!%p1471_p8), %s1605_s6, 8  ;;  %s250_s10 = scalar_lea.sflag (!%p1471_p8), [#allocation3], %s1605_s6 }
  0x64   : > { %s1609_s9 = scalar_lea.vmem (!%p1471_p8), [#allocation2], %s969_s21  ;;  %p1764_p7 = scmp.ne.s32.totalorder (!%p1471_p8), %s1758_s25, 0 }
  0x69   : > { %1347 = dma.done.wait (%p1764_p7), %s250_s10, 4096  }
  0x6a   : > { %1349 = vsyncadd (%p1764_p7), %s250_s10, 4294963200  ;;  %p1765_p2 = scmp.ne.s32.totalorder %s1756_s23, 0 }
  0x6c   : > { %1351 = dma.done.wait (%p1765_p2), [#allocation6], 6144  }
  0x6d   : > { %1353 = vsyncadd (%p1765_p2), [#allocation6], 4294961152  ;;  %v366_v0 = vld [vmem:[#allocation7] sm:$0xff]  ;;  %v367_v1 = vld [vmem:[#allocation7 + $0x8] sm:$0xff]  ;;  %s972_s23 = sshll.u32 %s1605_s6, 7  ;;  %s981_s13 = sshll.u32 %s1372_s18, 11 }
  0x6e   : > { %v368_v2 = vld [vmem:[#allocation7 + $0x10] sm:$0xff]  ;;  %v382_v3 = vpack.c.bf16 %v367_v1, %v366_v0  ;;  %v369_v4 = vld [vmem:[#allocation7 + $0x18] sm:$0xff]  ;;  %v370_v6 = vld [vmem:[#allocation7 + $0x20] sm:$0xff]  ;;  %s1658_s12 = scalar_lea.vmem [#allocation8], %s972_s23  ;;  %s1693_s24 = scalar_lea.hbm %s1751_s4, %s981_s13 }
  0x6f   : > { %v383_v5 = vpack.c.bf16 %v369_v4, %v368_v2  ;;  %v371_v7 = vld [vmem:[#allocation7 + $0x28] sm:$0xff]  ;;  %v318_v9 = vld [vmem:[#allocation5] sm:$0xff]  ;;  %v372_v11 = vld [vmem:[#allocation7 + $0x30] sm:$0xff]  ;;  %s833_s29 = sshll.u32 %s1658_s12, 4  ;;  %s819_s7 = scalar_lea.sflag [#allocation4], %s1605_s6  ;;  %s1695_s29 = int_to_ptr.vmem [resolvable:$true] %s833_s29 }
  0x70   : > { %1070 = vmatprep.subr.bf16.mxu0 %v382_v3  ;;  %v384_v8 = vpack.c.bf16 %v371_v7, %v370_v6  ;;  %v319_v10 = vld [vmem:[#allocation5 + $0x8] sm:$0xff]  ;;  %v373_v12 = vld [vmem:[#allocation7 + $0x38] sm:$0xff]  ;;  %v374_v15 = vld [vmem:[#allocation7 + $0x40] sm:$0xff]  ;;  %s1294_s28 = scalar_lea.vmem %s1695_s29, 2048  ;;  %p1766_p12 = scmp.ne.s32.totalorder %s1762_s30, 0 }
  0x71   : > { %1071 = vmatpush3.bf16.msra.mxu0 %v382_v3  ;;  %v350_v13 = vpack.c.bf16 %v319_v10, %v318_v9  ;;  %v385_v14 = vpack.c.bf16 %v373_v12, %v372_v11  ;;  %v375_v16 = vld [vmem:[#allocation7 + $0x48] sm:$0xff]  ;;  %v376_v18 = vld [vmem:[#allocation7 + $0x50] sm:$0xff]  ;;  %v377_v19 = vld [vmem:[#allocation7 + $0x58] sm:$0xff]  ;;  %p1295_p8 = scmp.ne.s32.totalorder %s1695_s29, %s1294_s28  ;;  %s1389_s18 = smov [#allocation8]  }
  0x72   : > { %1072 = vmatprep.subr.bf16.mxu0 %v383_v5  ;;  %v386_v17 = vpack.c.bf16 %v375_v16, %v374_v15  ;;  %v387_v20 = vpack.c.bf16 %v377_v19, %v376_v18  ;;  %v378_v21 = vld [vmem:[#allocation7 + $0x60] sm:$0xff]  ;;  %v379_v22 = vld [vmem:[#allocation7 + $0x68] sm:$0xff]  ;;  %v380_v24 = vld [vmem:[#allocation7 + $0x70] sm:$0xff]  ;;  %s1298_s8 = sshll.u32 %s1389_s18, 4  ;;  %s1299_s8 = int_to_ptr.vmem [resolvable:$false] %s1298_s8 }
  0x73   : > { %1086 = vmatprep.mubr.bf16.mxu0 %v350_v13  ;;  %v388_v23 = vpack.c.bf16 %v379_v22, %v378_v21  ;;  %v381_v25 = vld [vmem:[#allocation7 + $0x78] sm:$0xff]  ;;  %v320_v27 = vld [vmem:[#allocation5 + $0x10] sm:$0xff]  ;;  %v322_v29 = vld [vmem:[#allocation5 + $0x20] sm:$0xff]  ;;  %p1296_p1 = pnand %p1295_p8, %p1766_p12  ;;  %s1300_s21 = scalar_lea.vmem %s1299_s8, 4096 }
  0x74   : > { %v389_v26 = vpack.c.bf16 %v381_v25, %v380_v24  ;;  %v321_v28 = vld [vmem:[#allocation5 + $0x18] sm:$0xff]  ;;  %v323_v30 = vld [vmem:[#allocation5 + $0x28] sm:$0xff]  ;;  %v324_v33 = vld [vmem:[#allocation5 + $0x30] sm:$0xff]  ;;  %p1301_p3 = scmp.lt.s32.totalorder %s1695_s29, %s1299_s8  ;;  %p1302_p5 = scmp.lt.s32.totalorder %s1300_s21, %s1294_s28 }
  0x75   : > { %1073 = vmatpush3.bf16.msra.mxu0 %v383_v5  ;;  %v351_v31 = vpack.c.bf16 %v321_v28, %v320_v27  ;;  %v352_v32 = vpack.c.bf16 %v323_v30, %v322_v29  ;;  %v325_v34 = vld [vmem:[#allocation5 + $0x38] sm:$0xff]  ;;  %v326_v35 = vld [vmem:[#allocation5 + $0x40] sm:$0xff]  ;;  %v327_v36 = vld [vmem:[#allocation5 + $0x48] sm:$0xff]  ;;  %p1297_p10 = pneg %p1296_p1 }
  0x76   : > { %1074 = vmatprep.subr.bf16.mxu0 %v384_v8  ;;  %v353_v37 = vpack.c.bf16 %v325_v34, %v324_v33  ;;  %v354_v38 = vpack.c.bf16 %v327_v36, %v326_v35  ;;  %v328_v39 = vld [vmem:[#allocation5 + $0x50] sm:$0xff]  ;;  %v329_v40 = vld [vmem:[#allocation5 + $0x58] sm:$0xff]  ;;  %v330_v41 = vld [vmem:[#allocation5 + $0x60] sm:$0xff]  ;;  %p1303_p9 = por %p1302_p5, %p1301_p3 }
  0x77   : > { %v331_v42 = vld [vmem:[#allocation5 + $0x68] sm:$0xff]  ;;  %v355_v43 = vpack.c.bf16 %v329_v40, %v328_v39  ;;  %v332_v45 = vld [vmem:[#allocation5 + $0x70] sm:$0xff]  ;;  %v333_v46 = vld [vmem:[#allocation5 + $0x78] sm:$0xff] }
  0x78   : > { %v356_v44 = vpack.c.bf16 %v331_v42, %v330_v41  ;;  %v334_v47 = vld [vmem:[#allocation5 + $0x80] sm:$0xff]  ;;  %v335_v48 = vld [vmem:[#allocation5 + $0x88] sm:$0xff]  ;;  %v357_v49 = vpack.c.bf16 %v333_v46, %v332_v45  ;;  %v336_v51 = vld [vmem:[#allocation5 + $0x90] sm:$0xff]  ;;  %p1304_p11 = pnand %p1303_p9, %p1297_p10 }
  0x79   : > { %1075 = vmatpush3.bf16.msra.mxu0 %v384_v8  ;;  %v358_v50 = vpack.c.bf16 %v335_v48, %v334_v47  ;;  %v337_v52 = vld [vmem:[#allocation5 + $0x98] sm:$0xff]  ;;  %v338_v53 = vld [vmem:[#allocation5 + $0xa0] sm:$0xff]  ;;  %v339_v54 = vld [vmem:[#allocation5 + $0xa8] sm:$0xff] }
  0x7a   : > { %1076 = vmatprep.subr.bf16.mxu0 %v385_v14  ;;  %v359_v55 = vpack.c.bf16 %v337_v52, %v336_v51  ;;  %v360_v56 = vpack.c.bf16 %v339_v54, %v338_v53  ;;  %v340_v57 = vld [vmem:[#allocation5 + $0xb0] sm:$0xff]  ;;  %v341_v58 = vld [vmem:[#allocation5 + $0xb8] sm:$0xff]  ;;  %v342_v59 = vld [vmem:[#allocation5 + $0xc0] sm:$0xff] }
  0x7b   : > { %v343_v60 = vld [vmem:[#allocation5 + $0xc8] sm:$0xff]  ;;  %v361_v61 = vpack.c.bf16 %v341_v58, %v340_v57  ;;  %v344_v63 = vld [vmem:[#allocation5 + $0xd0] sm:$0xff]  ;;  %v345_v0 = vld [vmem:[#allocation5 + $0xd8] sm:$0xff] }
  0x7c   : > { %v362_v62 = vpack.c.bf16 %v343_v60, %v342_v59  ;;  %v346_v1 = vld [vmem:[#allocation5 + $0xe0] sm:$0xff]  ;;  %v347_v2 = vld [vmem:[#allocation5 + $0xe8] sm:$0xff]  ;;  %v363_v3 = vpack.c.bf16 %v345_v0, %v344_v63  ;;  %v348_v5 = vld [vmem:[#allocation5 + $0xf0] sm:$0xff] }
  0x7d   : > { %1077 = vmatpush3.bf16.msra.mxu0 %v385_v14  ;;  %v364_v4 = vpack.c.bf16 %v347_v2, %v346_v1  ;;  %v349_v6 = vld [vmem:[#allocation5 + $0xf8] sm:$0xff]  ;;  %v568_v8 = vld [vmem:[%s1609_s9 + $0x8] sm:$0xff]  ;;  %v567_v59 = vld [vmem:[%s1609_s9] sm:$0xff] }
  0x7e   : > { %1078 = vmatprep.subr.bf16.mxu0 %v386_v17  ;;  %v365_v7 = vpack.c.bf16 %v349_v6, %v348_v5  ;;  %v570_v9 = vld [vmem:[%s1609_s9 + $0x18] sm:$0xff]  ;;  %v569_v60 = vld [vmem:[%s1609_s9 + $0x10] sm:$0xff]  ;;  %v571_v1 = vld [vmem:[%s1609_s9 + $0x20] sm:$0xff] }
  0x7f   : > { %v600_v10 = vpack.c.bf16 %v570_v9, %v568_v8  ;;  %v599_v63 = vpack.c.bf16 %v569_v60, %v567_v59  ;;  %v573_v2 = vld [vmem:[%s1609_s9 + $0x30] sm:$0xff]  ;;  %v580_v9 = vld [vmem:[%s1609_s9 + $0x68] sm:$0xff] }
  0x80   : > { %v601_v5 = vpack.c.bf16 %v573_v2, %v571_v1  ;;  %v577_v8 = vld [vmem:[%s1609_s9 + $0x50] sm:$0xff] }
  0x81   : > { %1079 = vmatpush3.bf16.msra.mxu0 %v386_v17  ;;  %663 = vmatprep.mubr.bf16.mxu1 %v600_v10  ;;  %v582_v10 = vld [vmem:[%s1609_s9 + $0x78] sm:$0xff] }
  0x82   : > { %1080 = vmatprep.subr.bf16.mxu0 %v387_v20 }
  0x85   : > { %1081 = vmatpush3.bf16.msra.mxu0 %v387_v20 }
  0x86   : > { %1082 = vmatprep.subr.bf16.mxu0 %v388_v23 }
  0x89   : > { %1083 = vmatpush3.bf16.msra.mxu0 %v388_v23 }
  0x8a   : > { %1084 = vmatprep.subr.bf16.mxu0 %v389_v26 }
  0x8d   : > { %1085 = vmatpush3.bf16.msra.mxu0 %v389_v26 }
  0x90   : > { %1087 = vmatmul.mubr.bf16.vlgmr.msra.gmra.mrb[0].mxu0 %v351_v31 }
  0x91   : > { %1090 = vmatprep.mubr.bf16.mxu0 %v352_v32 }
  0x98   : > { %1091 = vmatmul.mubr.bf16.gmra.mrb[4].mxu0 %v353_v37 }
  0x99   : > { %1094 = vmatprep.mubr.bf16.mxu0 %v354_v38 }
  0xa0   : > { %1095 = vmatmul.mubr.bf16.gmra.mrb[8].mxu0 %v355_v43 }
  0xa1   : > { %1098 = vmatprep.mubr.bf16.mxu0 %v356_v44 }
  0xa8   : > { %1099 = vmatmul.mubr.bf16.gmra.mrb[12].mxu0 %v357_v49 }
  0xa9   : > { %1102 = vmatprep.mubr.bf16.mxu0 %v358_v50 }
  0xb0   : > { %1103 = vmatmul.mubr.bf16.gmra.mrb[16].mxu0 %v359_v55 }
  0xb1   : > { %1106 = vmatprep.mubr.bf16.mxu0 %v360_v56 }
  0xb8   : > { %1107 = vmatmul.mubr.bf16.gmra.mrb[20].mxu0 %v361_v61  ;;  %v572_v61 = vld [vmem:[%s1609_s9 + $0x28] sm:$0xff] }
  0xb9   : > { %1110 = vmatprep.mubr.bf16.mxu0 %v362_v62  ;;  %v574_v62 = vld [vmem:[%s1609_s9 + $0x38] sm:$0xff] }
  0xba   : > { %v602_v0 = vpack.c.bf16 %v574_v62, %v572_v61 }
  0xc0   : > { %1111 = vmatmul.mubr.bf16.gmra.mrb[24].mxu0 %v363_v3  ;;  %v576_v3 = vld [vmem:[%s1609_s9 + $0x48] sm:$0xff] }
  0xc1   : > { %1114 = vmatprep.mubr.bf16.mxu0 %v364_v4  ;;  %v578_v4 = vld [vmem:[%s1609_s9 + $0x58] sm:$0xff] }
  0xc2   : > { %v604_v6 = vpack.c.bf16 %v578_v4, %v576_v3 }
  0xc8   : > { %1115 = vmatmul.mubr.bf16.gmra.mrb[28].mxu0 %v365_v7  ;;  %v575_v7 = vld [vmem:[%s1609_s9 + $0x40] sm:$0xff] }
 0x163   : > { %v1088_v11 = vpop.f32.mrb[0].mxu0 }
 0x164   : > { %v424_v12 = vpop.f32.mrb[1].mxu0 }
 0x165   : > { %v1089_v13 = vpop.f32.mrb[2].mxu0 }
 0x166   : > { %v552_v14 = vpack.c.bf16 %v1089_v13, %v1088_v11  ;;  %v427_v15 = vpop.f32.mrb[3].mxu0  ;;  %v603_v11 = vpack.c.bf16 %v577_v8, %v575_v7  ;;  %v579_v13 = vld [vmem:[%s1609_s9 + $0x60] sm:$0xff] }
 0x167   : > { %v551_v16 = vpack.c.bf16 %v427_v15, %v424_v12  ;;  %v606_v12 = vpack.c.bf16 %v582_v10, %v580_v9  ;;  %v584_v15 = vld [vmem:[%s1609_s9 + $0x88] sm:$0xff] }
 0x16b   : > { %v1092_v17 = vpop.f32.mrb[4].mxu0 }
 0x16c   : > { %v440_v18 = vpop.f32.mrb[5].mxu0 }
 0x16d   : > { %v1093_v19 = vpop.f32.mrb[6].mxu0 }
 0x16e   : > { %v554_v20 = vpack.c.bf16 %v1093_v19, %v1092_v17  ;;  %v443_v21 = vpop.f32.mrb[7].mxu0  ;;  %v583_v19 = vld [vmem:[%s1609_s9 + $0x80] sm:$0xff] }
 0x16f   : > { %v553_v22 = vpack.c.bf16 %v443_v21, %v440_v18  ;;  %v588_v21 = vld [vmem:[%s1609_s9 + $0xa8] sm:$0xff] }
 0x173   : > { %v1096_v23 = vpop.f32.mrb[8].mxu0 }
 0x174   : > { %v456_v24 = vpop.f32.mrb[9].mxu0 }
 0x175   : > { %v1097_v25 = vpop.f32.mrb[10].mxu0 }
 0x176   : > { %v556_v26 = vpack.c.bf16 %v1097_v25, %v1096_v23  ;;  %v459_v27 = vpop.f32.mrb[11].mxu0  ;;  %v587_v25 = vld [vmem:[%s1609_s9 + $0xa0] sm:$0xff] }
 0x177   : > { %v555_v28 = vpack.c.bf16 %v459_v27, %v456_v24  ;;  %v592_v27 = vld [vmem:[%s1609_s9 + $0xc8] sm:$0xff] }
 0x17b   : > { %v1100_v29 = vpop.f32.mrb[12].mxu0 }
 0x17c   : > { %v472_v30 = vpop.f32.mrb[13].mxu0 }
 0x17d   : > { %v1101_v31 = vpop.f32.mrb[14].mxu0 }
 0x17e   : > { %v558_v32 = vpack.c.bf16 %v1101_v31, %v1100_v29  ;;  %v475_v33 = vpop.f32.mrb[15].mxu0  ;;  %v591_v31 = vld [vmem:[%s1609_s9 + $0xc0] sm:$0xff] }
 0x17f   : > { %v557_v34 = vpack.c.bf16 %v475_v33, %v472_v30  ;;  %v596_v33 = vld [vmem:[%s1609_s9 + $0xe8] sm:$0xff] }
 0x183   : > { %v1104_v35 = vpop.f32.mrb[16].mxu0 }
 0x184   : > { %v488_v36 = vpop.f32.mrb[17].mxu0 }
 0x185   : > { %v1105_v37 = vpop.f32.mrb[18].mxu0 }
 0x186   : > { %v560_v38 = vpack.c.bf16 %v1105_v37, %v1104_v35  ;;  %v491_v39 = vpop.f32.mrb[19].mxu0  ;;  %v595_v37 = vld [vmem:[%s1609_s9 + $0xe0] sm:$0xff] }
 0x187   : > { %v559_v40 = vpack.c.bf16 %v491_v39, %v488_v36 }
 0x189   : > { %1006 = vmatprep.subr.bf16.mxu1 %v559_v40 }
 0x18a   : > { %1007 = vmatpush3.bf16.msra.mxu1 %v551_v16  ;;  %v586_v16 = vld [vmem:[%s1609_s9 + $0x98] sm:$0xff] }
 0x18b   : > { %v1108_v41 = vpop.f32.mrb[20].mxu0  ;;  %1008 = vmatprep.subr.bf16.mxu1 %v560_v38  ;;  %v608_v18 = vpack.c.bf16 %v586_v16, %v584_v15  ;;  %v597_v38 = vld [vmem:[%s1609_s9 + $0xf0] sm:$0xff] }
 0x18c   : > { %v504_v42 = vpop.f32.mrb[21].mxu0  ;;  %v613_v39 = vpack.c.bf16 %v597_v38, %v595_v37 }
 0x18d   : > { %v1109_v43 = vpop.f32.mrb[22].mxu0 }
 0x18e   : > { %v562_v44 = vpack.c.bf16 %v1109_v43, %v1108_v41  ;;  %v507_v45 = vpop.f32.mrb[23].mxu0  ;;  %1009 = vmatpush3.bf16.msra.mxu1 %v552_v14  ;;  %v581_v14 = vld [vmem:[%s1609_s9 + $0x70] sm:$0xff] }
 0x18f   : > { %v561_v46 = vpack.c.bf16 %v507_v45, %v504_v42  ;;  %v605_v17 = vpack.c.bf16 %v581_v14, %v579_v13 }
 0x191   : > { %1010 = vmatprep.subr.bf16.mxu1 %v561_v46 }
 0x192   : > { %1011 = vmatpush3.bf16.msra.mxu1 %v553_v22  ;;  %v590_v22 = vld [vmem:[%s1609_s9 + $0xb8] sm:$0xff] }
 0x193   : > { %v1112_v47 = vpop.f32.mrb[24].mxu0  ;;  %1012 = vmatprep.subr.bf16.mxu1 %v562_v44  ;;  %v610_v24 = vpack.c.bf16 %v590_v22, %v588_v21  ;;  %v1655_v44 = vld [vmem:[%s1750_s3] ss:$0 sm:$0xff] }
 0x194   : > { %v520_v48 = vpop.f32.mrb[25].mxu0 }
 0x195   : > { %v1113_v49 = vpop.f32.mrb[26].mxu0 }
 0x196   : > { %v564_v50 = vpack.c.bf16 %v1113_v49, %v1112_v47  ;;  %v523_v51 = vpop.f32.mrb[27].mxu0  ;;  %1013 = vmatpush3.bf16.msra.mxu1 %v554_v20  ;;  %v585_v20 = vld [vmem:[%s1609_s9 + $0x90] sm:$0xff] }
 0x197   : > { %v563_v52 = vpack.c.bf16 %v523_v51, %v520_v48  ;;  %v607_v23 = vpack.c.bf16 %v585_v20, %v583_v19 }
 0x199   : > { %1014 = vmatprep.subr.bf16.mxu1 %v563_v52 }
 0x19a   : > { %1015 = vmatpush3.bf16.msra.mxu1 %v555_v28  ;;  %v594_v28 = vld [vmem:[%s1609_s9 + $0xd8] sm:$0xff] }
 0x19b   : > { %v1116_v53 = vpop.f32.mrb[28].mxu0  ;;  %1016 = vmatprep.subr.bf16.mxu1 %v564_v50  ;;  %v612_v30 = vpack.c.bf16 %v594_v28, %v592_v27 }
 0x19c   : > { %v536_v54 = vpop.f32.mrb[29].mxu0 }
 0x19d   : > { %v1117_v55 = vpop.f32.mrb[30].mxu0 }
 0x19e   : > { %v566_v56 = vpack.c.bf16 %v1117_v55, %v1116_v53  ;;  %v539_v57 = vpop.f32.mrb[31].mxu0  ;;  %1017 = vmatpush3.bf16.msra.mxu1 %v556_v26  ;;  %v589_v26 = vld [vmem:[%s1609_s9 + $0xb0] sm:$0xff] }
 0x19f   : > { %v565_v58 = vpack.c.bf16 %v539_v57, %v536_v54  ;;  %v609_v29 = vpack.c.bf16 %v589_v26, %v587_v25 }
 0x1a1   : > { %1018 = vmatprep.subr.bf16.mxu1 %v565_v58 }
 0x1a2   : > { %1019 = vmatpush3.bf16.msra.mxu1 %v557_v34  ;;  %v598_v34 = vld [vmem:[%s1609_s9 + $0xf8] sm:$0xff] }
 0x1a3   : > { %1020 = vmatprep.subr.bf16.mxu1 %v566_v56  ;;  %v614_v36 = vpack.c.bf16 %v598_v34, %v596_v33 }
 0x1a6   : > { %1021 = vmatpush3.bf16.msra.mxu1 %v558_v32  ;;  %v593_v32 = vld [vmem:[%s1609_s9 + $0xd0] sm:$0xff] }
 0x1a7   : > { %v611_v35 = vpack.c.bf16 %v593_v32, %v591_v31 }
 0x1a9   : > { %664 = vmatmul.mubr.bf16.vlgmr.msra.gmra.mrb[0].mxu1 %v599_v63 }
 0x1aa   : > { %671 = vmatprep.mubr.bf16.mxu1 %v602_v0 }
 0x1b1   : > { %672 = vmatmul.mubr.bf16.gmra.mrb[4].mxu1 %v601_v5 }
 0x1b2   : > { %679 = vmatprep.mubr.bf16.mxu1 %v604_v6 }
 0x1b9   : > { %680 = vmatmul.mubr.bf16.gmra.mrb[8].mxu1 %v603_v11 }
 0x1ba   : > { %687 = vmatprep.mubr.bf16.mxu1 %v606_v12 }
 0x1c1   : > { %688 = vmatmul.mubr.bf16.gmra.mrb[12].mxu1 %v605_v17 }
 0x1c2   : > { %695 = vmatprep.mubr.bf16.mxu1 %v608_v18 }
 0x1c9   : > { %696 = vmatmul.mubr.bf16.gmra.mrb[16].mxu1 %v607_v23 }
 0x1ca   : > { %703 = vmatprep.mubr.bf16.mxu1 %v610_v24 }
 0x1d1   : > { %704 = vmatmul.mubr.bf16.gmra.mrb[20].mxu1 %v609_v29 }
 0x1d2   : > { %711 = vmatprep.mubr.bf16.mxu1 %v612_v30 }
 0x1d9   : > { %712 = vmatmul.mubr.bf16.gmra.mrb[24].mxu1 %v611_v35 }
 0x1da   : > { %719 = vmatprep.mubr.bf16.mxu1 %v614_v36 }
 0x1e1   : > { %720 = vmatmul.mubr.bf16.gmra.mrb[28].mxu1 %v613_v39 }
 0x27c   : > { %v1022_v40 = vpop.f32.mrb[0].mxu1 }
 0x27d   : > { %v1023_v41 = vpop.f32.mrb[1].mxu1 }
 0x27e   : > { %v1024_v42 = vadd.f32 %v1023_v41, %v1022_v40  ;;  %v1025_v43 = vpop.f32.mrb[2].mxu1 }
 0x27f   : > { %v1026_v45 = vpop.f32.mrb[3].mxu1 }
 0x280   : > { %v1027_v46 = vadd.f32 %v1026_v45, %v1025_v43  ;;  %v786_v47 = vadd.f32 %v1024_v42, %v1655_v44 }
 0x282   : > { %802 = vst [vmem:[%s1658_s12] sm:$0xff] %v786_v47  ;;  %v787_v48 = vadd.f32 %v1027_v46, %v1655_v44 }
 0x284   : > { %v1028_v49 = vpop.f32.mrb[4].mxu1  ;;  %803 = vst [vmem:[%s1658_s12 + $0x8] sm:$0xff] %v787_v48 }
 0x285   : > { %v1029_v50 = vpop.f32.mrb[5].mxu1 }
 0x286   : > { %v1030_v51 = vadd.f32 %v1029_v50, %v1028_v49  ;;  %v1031_v52 = vpop.f32.mrb[6].mxu1 }
 0x287   : > { %v1032_v53 = vpop.f32.mrb[7].mxu1 }
 0x288   : > { %v1033_v54 = vadd.f32 %v1032_v53, %v1031_v52  ;;  %v788_v55 = vadd.f32 %v1030_v51, %v1655_v44 }
 0x28a   : > { %804 = vst [vmem:[%s1658_s12 + $0x10] sm:$0xff] %v788_v55  ;;  %v789_v56 = vadd.f32 %v1033_v54, %v1655_v44 }
 0x28c   : > { %v1034_v57 = vpop.f32.mrb[8].mxu1  ;;  %805 = vst [vmem:[%s1658_s12 + $0x18] sm:$0xff] %v789_v56 }
 0x28d   : > { %v1035_v58 = vpop.f32.mrb[9].mxu1 }
 0x28e   : > { %v1036_v59 = vadd.f32 %v1035_v58, %v1034_v57  ;;  %v1037_v60 = vpop.f32.mrb[10].mxu1 }
 0x28f   : > { %v1038_v61 = vpop.f32.mrb[11].mxu1 }
 0x290   : > { %v1039_v62 = vadd.f32 %v1038_v61, %v1037_v60  ;;  %v790_v63 = vadd.f32 %v1036_v59, %v1655_v44 }
 0x292   : > { %806 = vst [vmem:[%s1658_s12 + $0x20] sm:$0xff] %v790_v63  ;;  %v791_v0 = vadd.f32 %v1039_v62, %v1655_v44 }
 0x294   : > { %v1040_v1 = vpop.f32.mrb[12].mxu1  ;;  %807 = vst [vmem:[%s1658_s12 + $0x28] sm:$0xff] %v791_v0 }
 0x295   : > { %v1041_v2 = vpop.f32.mrb[13].mxu1 }
 0x296   : > { %v1042_v3 = vadd.f32 %v1041_v2, %v1040_v1  ;;  %v1043_v4 = vpop.f32.mrb[14].mxu1 }
 0x297   : > { %v1044_v5 = vpop.f32.mrb[15].mxu1 }
 0x298   : > { %v1045_v6 = vadd.f32 %v1044_v5, %v1043_v4  ;;  %v792_v7 = vadd.f32 %v1042_v3, %v1655_v44 }
 0x29a   : > { %808 = vst [vmem:[%s1658_s12 + $0x30] sm:$0xff] %v792_v7  ;;  %v793_v8 = vadd.f32 %v1045_v6, %v1655_v44 }
 0x29c   : > { %v1046_v9 = vpop.f32.mrb[16].mxu1  ;;  %809 = vst [vmem:[%s1658_s12 + $0x38] sm:$0xff] %v793_v8 }
 0x29d   : > { %v1047_v10 = vpop.f32.mrb[17].mxu1 }
 0x29e   : > { %v1048_v11 = vadd.f32 %v1047_v10, %v1046_v9  ;;  %v1049_v12 = vpop.f32.mrb[18].mxu1 }
 0x29f   : > { %v1050_v13 = vpop.f32.mrb[19].mxu1 }
 0x2a0   : > { %v1051_v14 = vadd.f32 %v1050_v13, %v1049_v12  ;;  %v794_v15 = vadd.f32 %v1048_v11, %v1655_v44 }
 0x2a2   : > { %810 = vst [vmem:[%s1658_s12 + $0x40] sm:$0xff] %v794_v15  ;;  %v795_v16 = vadd.f32 %v1051_v14, %v1655_v44 }
 0x2a4   : > { %v1052_v17 = vpop.f32.mrb[20].mxu1  ;;  %811 = vst [vmem:[%s1658_s12 + $0x48] sm:$0xff] %v795_v16 }
 0x2a5   : > { %v1053_v18 = vpop.f32.mrb[21].mxu1 }
 0x2a6   : > { %v1054_v19 = vadd.f32 %v1053_v18, %v1052_v17  ;;  %v1055_v20 = vpop.f32.mrb[22].mxu1 }
 0x2a7   : > { %v1056_v21 = vpop.f32.mrb[23].mxu1 }
 0x2a8   : > { %v1057_v22 = vadd.f32 %v1056_v21, %v1055_v20  ;;  %v796_v23 = vadd.f32 %v1054_v19, %v1655_v44 }
 0x2aa   : > { %812 = vst [vmem:[%s1658_s12 + $0x50] sm:$0xff] %v796_v23  ;;  %v797_v24 = vadd.f32 %v1057_v22, %v1655_v44 }
 0x2ac   : > { %v1058_v25 = vpop.f32.mrb[24].mxu1  ;;  %813 = vst [vmem:[%s1658_s12 + $0x58] sm:$0xff] %v797_v24 }
 0x2ad   : > { %v1059_v26 = vpop.f32.mrb[25].mxu1 }
 0x2ae   : > { %v1060_v27 = vadd.f32 %v1059_v26, %v1058_v25  ;;  %v1061_v28 = vpop.f32.mrb[26].mxu1 }
 0x2af   : > { %v1062_v29 = vpop.f32.mrb[27].mxu1 }
 0x2b0   : > { %v1063_v30 = vadd.f32 %v1062_v29, %v1061_v28  ;;  %v798_v31 = vadd.f32 %v1060_v27, %v1655_v44 }
 0x2b2   : > { %814 = vst [vmem:[%s1658_s12 + $0x60] sm:$0xff] %v798_v31  ;;  %v799_v32 = vadd.f32 %v1063_v30, %v1655_v44 }
 0x2b4   : > { %v1064_v33 = vpop.f32.mrb[28].mxu1  ;;  %815 = vst [vmem:[%s1658_s12 + $0x68] sm:$0xff] %v799_v32 }
 0x2b5   : > { %v1065_v34 = vpop.f32.mrb[29].mxu1 }
 0x2b6   : > { %v1066_v35 = vadd.f32 %v1065_v34, %v1064_v33  ;;  %v1067_v36 = vpop.f32.mrb[30].mxu1 }
 0x2b7   : > { %v1068_v37 = vpop.f32.mrb[31].mxu1 }
 0x2b8   : > { %v1069_v38 = vadd.f32 %v1068_v37, %v1067_v36  ;;  %v800_v39 = vadd.f32 %v1066_v35, %v1655_v44 }
 0x2ba   : > { %816 = vst [vmem:[%s1658_s12 + $0x70] sm:$0xff] %v800_v39  ;;  %v801_v40 = vadd.f32 %v1069_v38, %v1655_v44 }
 0x2bc   : > { %817 = vst [vmem:[%s1658_s12 + $0x78] sm:$0xff] %v801_v40 }
 0x2bd   : > { %1307 = shalt.err (!%p1304_p11)
}
 0x2be   : > { %s1308_s10 = scalar_lea.hbm %s1693_s24, 2048  ;;  %s1312_s25 = scalar_lea.hbm %s1751_s4, 4096 }
 0x2bf   : > { %p1309_p0 = scmp.ne.s32.totalorder %s1693_s24, %s1308_s10  ;;  %p1313_p6 = scmp.lt.u32.totalorder %s1693_s24, %s1751_s4 }
 0x2c0   : > { %p1314_p7 = scmp.lt.u32.totalorder %s1312_s25, %s1308_s10  ;;  %p1316_p8 = scmp.lt.u32.totalorder %s1308_s10, %s1693_s24 }
 0x2c1   : > { %p1310_p4 = pnand %p1309_p0, %p1766_p12 }
 0x2c2   : > { %p1315_p2 = por %p1314_p7, %p1313_p6 }
 0x2c3   : > { %p1311_p13 = pneg %p1310_p4 }
 0x2c4   : > { %p1317_p1 = por %p1316_p8, %p1315_p2 }
 0x2c6   : > { %p1318_p10 = pnand %p1317_p1, %p1311_p13 }
 0x2c8   : > { %1321 = shalt.err (!%p1318_p10)
}
 0x2c9   : > { %s1390_s13 = smov 128   ;;  %s1391_s14 = smov 8  }
 0x2ca   : > { %1128 = dma.vmem_to_hbm [thread:$0]  (%p1766_p12), %s1695_s29, 2048, %s1693_s24, %s819_s7, %s1390_s13, %s1390_s13, %s1391_s14  }
 0x2cb PF: > { %s848_s11 = sand.u32 1, %s1360_s15   ;;  %p1767_p3 = scmp.ne.s32.totalorder %s1759_s26, 0 }
 0x2cc   : > { %p1768_p5 = scmp.ge.s32.totalorder %s1380_s20, 2  ;;  %s849_s28 = scalar_lea.sflag [#allocation4], %s848_s11 }
 0x2ce   : > { %p1142_p9 = pnand %p1768_p5, %p1767_p3 }
 0x2d0   : > { %1355 = dma.done.wait (!%p1142_p9), %s849_s28, 2048  }
 0x2d1   : > { %1357 = vsyncadd (!%p1142_p9), %s849_s28, 4294965248  ;;  %s21_s20 = sadd.s32 1, %s1380_s20   ;;  %s1769_s15 = smov %s1364_s16 }
 0x2d2   : > { %p18_p11 = scmp.ge.s32.totalorder %s21_s20, 4   ;;  %s1770_s16 = smov %s1368_s17 }
 0x2d3   : > { %s1771_s17 = smov %s1559_s22  ;;  %s1772_s18 = smov %s1376_s19 }
 0x2d4   : > { %s1773_s19 = smov %s1775_s5  ;;  %20 = sbr.rel (!%p18_p11) target bundleno = 7 (0x7), region = 102 }
 0x2db   :  { %854 = vsyncpa [#allocation3], 1 }
 0x2dc   :  { %856 = vsyncpa [#allocation3 + $0x1], 1 }
 0x2dd   :  { %857 = vsyncpa [#allocation6], 1 }
 0x2de   :  { %858 = vsyncpa [#allocation4], 1 }
 0x2df   :  { %860 = vsyncpa [#allocation4 + $0x1], 1 }

</bundles_post_ra>
